<compile_context>
chip_gen: v5e
topology: v5e:2x2
jax: 0.10.0
libtpu: 0.0.40
codegen_flags: <defaults>
</compile_context>

<pallas_src>
import numpy as np
import jax
import jax.numpy as jnp
from jax.experimental import pallas as pl
from jax.experimental.pallas import tpu as pltpu

BN_EPS = 1e-5
RELU_FLOOR = 0.0
NO_RELU_FLOOR = float(np.finfo(np.float32).min)     # max(y, this) == y


# --------------------------------------------------------------------------- #
# Small utilities
# --------------------------------------------------------------------------- #
_BUFFERED_OK = None


def _probe_buffered():
    """Check once whether pipeline_mode=pl.Buffered(1) is supported."""
    try:
        def k(x_ref, o_ref):
            o_ref[...] = x_ref[...]

        spec = pl.BlockSpec((8, 128), lambda i: (0, 0), pipeline_mode=pl.Buffered(1))
        f = pl.pallas_call(
            k, grid=(1,),
            in_specs=[spec],
            out_specs=pl.BlockSpec((8, 128), lambda i: (0, 0)),
            out_shape=jax.ShapeDtypeStruct((8, 128), jnp.float32))
        jax.block_until_ready(f(jnp.zeros((8, 128), jnp.float32)))
        return True
    except Exception:
        return False


def _const_spec(block_shape, index_map):
    """BlockSpec for grid-invariant blocks; single-buffered when supported."""
    global _BUFFERED_OK
    if _BUFFERED_OK is None:
        _BUFFERED_OK = _probe_buffered()
    if _BUFFERED_OK:
        return pl.BlockSpec(block_shape, index_map, pipeline_mode=pl.Buffered(1))
    return pl.BlockSpec(block_shape, index_map)


def _vmem_limit_bytes(est_bytes):
    """Request enough VMEM for our blocks+accumulators, capped at 75% of capacity."""
    cap = 128 * 1024 * 1024
    try:
        cap = int(getattr(pltpu.get_tpu_info(), "vmem_capacity_bytes", cap))
    except Exception:
        pass
    hi = int(0.75 * cap)
    want = max(32 * 1024 * 1024, int(2 * est_bytes) + (2 << 20))
    return max(min(hi, want), 1 << 20)


def _pick_tile_h(ho):
    for cand in (32, 16, 8):
        if ho >= cand and ho % cand == 0:
            return cand
    return ho


# --------------------------------------------------------------------------- #
# Small-spatial "row matmul" path: one banded matmul per kh, lane-dense output.
# --------------------------------------------------------------------------- #
def _banded_weight(w, W, Wo, stride):
    """(3,3,Cin,Cout) numpy f32 -> (3, W*Cin, Wo*Cout) bf16 banded weight.

    BW[kh, ci*Cin + c, w*Cout + o] = w[kh, kw, c, o] with kw = ci - stride*w + 1,
    i.e. the kw taps, all input columns and the pad=1 column handling are folded
    into the contraction dimension.
    """
    _, _, cin, cout = w.shape
    bw = np.zeros((3, W, cin, Wo, cout), np.float32)
    for kh in range(3):
        for wo_i in range(Wo):
            for kw in range(3):
                ci = stride * wo_i + kw - 1
                if 0 <= ci < W:
                    bw[kh, ci, :, wo_i, :] = w[kh, kw]
    return jnp.asarray(bw.reshape(3, W * cin, Wo * cout), dtype=jnp.bfloat16)


def _make_row_kernel(*, stride, nb, ho, k, nout, has_res):
    def kernel(*refs):
        if has_res:
            x_ref, w_ref, shift_ref, floor_ref, res_ref, out_ref, acc_ref = refs
        else:
            x_ref, w_ref, shift_ref, floor_ref, out_ref, acc_ref = refs
            res_ref = None

        def band_mm(rows, kh):
            lhs = rows.reshape(rows.shape[0] * rows.shape[1], k)
            return jnp.dot(lhs, w_ref[kh], preferred_element_type=jnp.float32)

        if stride == 1:
            # x_ref: (nb, H, W*Cin); output row r uses image rows r-1, r, r+1.
            acc_ref[...] = band_mm(x_ref[...], 1).reshape(nb, ho, nout)
            if ho > 1:
                acc_ref[:, pl.ds(1, ho - 1), :] += band_mm(
                    x_ref[:, pl.ds(0, ho - 1), :], 0).reshape(nb, ho - 1, nout)
                acc_ref[:, pl.ds(0, ho - 1), :] += band_mm(
                    x_ref[:, pl.ds(1, ho - 1), :], 2).reshape(nb, ho - 1, nout)
        else:
            # x_ref: (nb, Ho, 2, W*Cin); [:, r, 0] = image row 2r, [:, r, 1] = row 2r+1.
            acc_ref[...] = band_mm(x_ref[:, :, 0, :], 1).reshape(nb, ho, nout)
            acc_ref[...] += band_mm(x_ref[:, :, 1, :], 2).reshape(nb, ho, nout)
            if ho > 1:
                acc_ref[:, pl.ds(1, ho - 1), :] += band_mm(
                    x_ref[:, pl.ds(0, ho - 1), 1, :], 0).reshape(nb, ho - 1, nout)

        y = acc_ref[...] + shift_ref[...]
        if has_res:
            y = y + res_ref[...].astype(jnp.float32)
        y = jnp.maximum(y, floor_ref[...])
        out_ref[...] = y.astype(out_ref.dtype)

    return kernel


def _conv_row_path(x, w, shift, floor, stride, residual):
    N, H, W, Cin = x.shape
    Cout = w.shape[-1]
    Ho, Wo = H // stride, W // stride
    K, Nout = W * Cin, Wo * Cout
    has_res = residual is not None

    bw = _banded_weight(w, W, Wo, stride)                       # (3, K, Nout) bf16
    shift_row = jnp.asarray(np.tile(shift, Wo).reshape(1, Nout))
    floor_row = jnp.asarray(np.tile(floor, Wo).reshape(1, Nout))

    x = x.astype(jnp.bfloat16)

    # Fold batch elements into the matmul M dimension (grow M for tiny feature maps).
    per_img = (2 * H * W * Cin * 2 + 2 * Ho * Nout * 2 + Ho * Nout * 4
               + (2 * Ho * Nout * 2 if has_res else 0))
    nb = 1
    for cand in range(N, 0, -1):
        if N % cand == 0 and cand * per_img <= (8 << 20):
            nb = cand
            break
    grid = (N // nb,)

    if stride == 1:
        x_in = x.reshape(N, H, K)
        x_spec = pl.BlockSpec((nb, H, K), lambda g: (g, 0, 0))
    else:
        x_in = x.reshape(N, Ho, 2, K)                 # row-parity split, free reshape
        x_spec = pl.BlockSpec((nb, Ho, 2, K), lambda g: (g, 0, 0, 0))

    w_spec = _const_spec((3, K, Nout), lambda g: (0, 0, 0))
    vec_spec = _const_spec((1, Nout), lambda g: (0, 0))
    io_spec = pl.BlockSpec((nb, Ho, Nout), lambda g: (g, 0, 0))

    args = [x_in, bw, shift_row, floor_row]
    in_specs = [x_spec, w_spec, vec_spec, vec_spec]
    if has_res:
        args.append(residual.astype(jnp.bfloat16).reshape(N, Ho, Nout))
        in_specs.append(io_spec)

    est = (2 * nb * H * W * Cin * 2 + 3 * K * Nout * 2 + 2 * nb * Ho * Nout * 2
           + nb * Ho * Nout * 4 + 2 * Nout * 4
           + (2 * nb * Ho * Nout * 2 if has_res else 0))
    flops = 2 * 9 * Cin * Cout * N * Ho * Wo
    bytes_acc = (N * H * W * Cin * 2 + 3 * K * Nout * 2 + N * Ho * Nout * 2
                 + (N * Ho * Nout * 2 if has_res else 0))

    kernel = _make_row_kernel(stride=stride, nb=nb, ho=Ho, k=K, nout=Nout,
                              has_res=has_res)
    out = pl.pallas_call(
        kernel,
        grid=grid,
        in_specs=in_specs,
        out_specs=io_spec,
        out_shape=jax.ShapeDtypeStruct((N, Ho, Nout), jnp.bfloat16),
        scratch_shapes=[pltpu.VMEM((nb, Ho, Nout), jnp.float32)],
        compiler_params=pltpu.CompilerParams(
            dimension_semantics=("parallel",),
            vmem_limit_bytes=_vmem_limit_bytes(est)),
        cost_estimate=pl.CostEstimate(flops=int(flops), transcendentals=0,
                                      bytes_accessed=int(bytes_acc)),
    )(*args)
    return out.reshape(N, Ho, Wo, Cout)


# --------------------------------------------------------------------------- #
# Large-spatial fallback path: per-tap matmuls on the padded image (proven path).
# --------------------------------------------------------------------------- #
def _make_tap_kernel(*, stride, tile_h, wo, cin, cout, has_res):
    m = tile_h * wo

    def kernel(*refs):
        if has_res:
            x_ref, w_ref, shift_ref, floor_ref, res_ref, out_ref = refs
        else:
            x_ref, w_ref, shift_ref, floor_ref, out_ref = refs
            res_ref = None

        t = pl.program_id(1)
        row0 = t * tile_h
        if tile_h & (tile_h - 1) == 0:
            row0 = pl.multiple_of(row0, tile_h)

        acc = jnp.zeros((m, cout), jnp.float32)
        if stride == 1:
            for kh in range(3):
                for kw in range(3):
                    patch = x_ref[0, pl.ds(row0 + kh, tile_h), pl.ds(kw, wo), :]
                    acc = acc + jnp.dot(patch.reshape(m, cin), w_ref[kh * 3 + kw],
                                        preferred_element_type=jnp.float32)
        else:
            for kh in range(3):
                roff, par = ((0, 0), (0, 1), (1, 0))[kh]
                a = x_ref[0, pl.ds(row0 + roff, tile_h), par, pl.ds(0, wo), :]
                b = x_ref[0, pl.ds(row0 + roff, tile_h), par, pl.ds(1, wo), 0:cin]
                acc = acc + jnp.dot(a.reshape(m, 2 * cin), w_ref[kh, 0:2 * cin, :],
                                    preferred_element_type=jnp.float32)
                acc = acc + jnp.dot(b.reshape(m, cin), w_ref[kh, 2 * cin:3 * cin, :],
                                    preferred_element_type=jnp.float32)

        y = (acc + shift_ref[...]).reshape(tile_h, wo, cout)
        if has_res:
            y = y + res_ref[0].astype(jnp.float32)
        y = jnp.maximum(y, floor_ref[...])
        out_ref[0] = y.astype(out_ref.dtype)

    return kernel


def _conv_tap_path(x, w, shift, floor, stride, residual):
    N, H, W, Cin = x.shape
    Cout = w.shape[-1]
    xp = jnp.pad(x.astype(jnp.bfloat16), ((0, 0), (1, 1), (1, 1), (0, 0)))
    Hp, Wp = H + 2, W + 2
    if stride == 1:
        Ho, Wo = H, W
        x_in = xp
        x_spec = pl.BlockSpec((1, Hp, Wp, Cin), lambda n, t: (n, 0, 0, 0))
        w_in = jnp.asarray(w.reshape(9, Cin, Cout), jnp.bfloat16)
        w_spec = _const_spec((9, Cin, Cout), lambda n, t: (0, 0, 0))
    else:
        Ho, Wo = H // 2, W // 2
        x_in = xp.reshape(N, Hp // 2, 2, Wp // 2, 2 * Cin)
        x_spec = pl.BlockSpec((1, Hp // 2, 2, Wp // 2, 2 * Cin),
                              lambda n, t: (n, 0, 0, 0, 0))
        w_in = jnp.asarray(w.reshape(3, 3 * Cin, Cout), jnp.bfloat16)
        w_spec = _const_spec((3, 3 * Cin, Cout), lambda n, t: (0, 0, 0))

    tile_h = _pick_tile_h(Ho)
    grid = (N, Ho // tile_h)            # batch axis first (megacore shards batches)

    vec_spec = _const_spec((1, Cout), lambda n, t: (0, 0))
    shift_v = jnp.asarray(shift.reshape(1, Cout), jnp.float32)
    floor_v = jnp.asarray(floor.reshape(1, Cout), jnp.float32)
    io_spec = pl.BlockSpec((1, tile_h, Wo, Cout), lambda n, t: (n, t, 0, 0))
    has_res = residual is not None

    args = [x_in, w_in, shift_v, floor_v]
    in_specs = [x_spec, w_spec, vec_spec, vec_spec]
    if has_res:
        args.append(residual.astype(jnp.bfloat16))
        in_specs.append(io_spec)

    kernel = _make_tap_kernel(stride=stride, tile_h=tile_h, wo=Wo, cin=Cin,
                              cout=Cout, has_res=has_res)

    est = (2 * Hp * Wp * Cin * 2 + 2 * 9 * Cin * Cout * 2 + 2 * 2 * Cout * 4
           + (2 + (2 if has_res else 0)) * tile_h * Wo * Cout * 2
           + tile_h * Wo * Cout * 4)
    flops = 2 * 9 * Cin * Cout * N * Ho * Wo
    bytes_acc = (N * Hp * Wp * Cin * 2 + 9 * Cin * Cout * 2 + N * Ho * Wo * Cout * 2
                 + (N * Ho * Wo * Cout * 2 if has_res else 0))

    return pl.pallas_call(
        kernel,
        grid=grid,
        in_specs=in_specs,
        out_specs=io_spec,
        out_shape=jax.ShapeDtypeStruct((N, Ho, Wo, Cout), jnp.bfloat16),
        compiler_params=pltpu.CompilerParams(
            dimension_semantics=("parallel", "parallel"),
            vmem_limit_bytes=_vmem_limit_bytes(est)),
        cost_estimate=pl.CostEstimate(flops=int(flops), transcendentals=0,
                                      bytes_accessed=int(bytes_acc)),
    )(*args)


# --------------------------------------------------------------------------- #
# Fused conv-site dispatcher and BasicBlock
# --------------------------------------------------------------------------- #
def conv3x3_bn_act(x, w, shift, floor, *, stride=1, residual=None):
    """Fused 3x3 conv (pad=1) + per-channel shift + max(., floor) [+ residual].

    x: (N,H,W,Cin) jnp.  w: numpy f32 (3,3,Cin,Cout) with any BN scale folded in.
    shift/floor: numpy f32 (Cout,).  Returns (N,Ho,Wo,Cout) bf16.
    """
    N, H, W, Cin = x.shape
    Cout = w.shape[-1]
    assert w.shape[:3] == (3, 3, Cin)
    assert stride in (1, 2)
    if stride == 2:
        assert H % 2 == 0 and W % 2 == 0, "stride-2 path assumes even H and W"
    w = np.asarray(w, np.float32)
    shift = np.asarray(shift, np.float32)
    floor = np.asarray(floor, np.float32)

    k_row = W * Cin
    n_row = (W // stride) * Cout
    use_row = (k_row <= 512 and n_row <= 2048 and 3 * k_row * n_row * 2 <= (4 << 20))
    if use_row:
        return _conv_row_path(x, w, shift, floor, stride, residual)
    return _conv_tap_path(x, w, shift, floor, stride, residual)


def basic_block(x, p):
    """BasicBlock: relu(bn2(conv2(relu(bn1(conv1(x))))) + identity)."""
    cout = int(p["w1"].shape[-1])
    s1 = np.asarray(p["bn1_scale"], np.float32)
    h1 = np.asarray(p["bn1_shift"], np.float32)
    s2 = np.asarray(p["bn2_scale"], np.float32)
    h2 = np.asarray(p["bn2_shift"], np.float32)
    w1 = np.asarray(p["w1"], np.float32) * s1          # BN1 scale folded into weights
    w2 = np.asarray(p["w2"], np.float32) * s2          # BN2 scale folded into weights
    relu = np.zeros((cout,), np.float32)
    no_relu = np.full((cout,), NO_RELU_FLOOR, np.float32)

    if "wd" in p:
        # First block of a stage: dual head (conv1 | 3x3 downsample conv) in one matmul,
        # then conv2 with the identity channels folded into its contraction (exact 1.0s).
        wd = np.asarray(p["wd"], np.float32)
        bd = np.asarray(p["bd"], np.float32)
        w_s1 = np.concatenate([w1, wd], axis=-1)                    # (3,3,Cin,2*cout)
        fused = conv3x3_bn_act(x, w_s1,
                               np.concatenate([h1, bd]),
                               np.concatenate([relu, no_relu]),
                               stride=p["stride"])                  # (N,Ho,Wo,2*cout)
        w2e = np.zeros((3, 3, 2 * cout, cout), np.float32)
        w2e[:, :, :cout, :] = w2
        w2e[1, 1, cout:, :] = np.eye(cout, dtype=np.float32)        # residual via MXU
        return conv3x3_bn_act(fused, w2e, h2, relu, stride=1)

    out1 = conv3x3_bn_act(x, w1, h1, relu, stride=p["stride"])
    return conv3x3_bn_act(out1, w2, h2, relu, stride=1, residual=x)


# --------------------------------------------------------------------------- #
# Pure-JAX reference with matching bf16 numerics
# --------------------------------------------------------------------------- #
def conv3x3_ref(x, w, scale, shift, *, stride=1, residual=None, relu=True):
    y = jax.lax.conv_general_dilated(
        x.astype(jnp.float32),
        jnp.asarray(w, jnp.float32).astype(jnp.bfloat16).astype(jnp.float32),
        (stride, stride), ((1, 1), (1, 1)),
        dimension_numbers=("NHWC", "HWIO", "NHWC"),
        precision=jax.lax.Precision.HIGHEST)
    y = y * scale.astype(jnp.float32) + shift.astype(jnp.float32)
    if residual is not None:
        y = y + residual.astype(jnp.float32)
    if relu:
        y = jnp.maximum(y, 0.0)
    return y.astype(jnp.bfloat16)


def basic_block_ref(x, p):
    out1 = conv3x3_ref(x, p["w1"], p["bn1_scale"], p["bn1_shift"],
                       stride=p["stride"], relu=True)
    if "wd" in p:
        cout = p["wd"].shape[-1]
        identity = conv3x3_ref(x, p["wd"], jnp.ones((cout,), jnp.float32), p["bd"],
                               stride=p["stride"], relu=False)
    else:
        identity = x
    return conv3x3_ref(out1, p["w2"], p["bn2_scale"], p["bn2_shift"],
                       stride=1, residual=identity, relu=True)


def resnet_bevdet_forward(x, params, block_fn, backbone_output_ids=None):
    ids = range(len(params)) if backbone_output_ids is None else backbone_output_ids
    feats = []
    x_tmp = x
    for lid, stage in enumerate(params):
        for blk in stage:
            x_tmp = block_fn(x_tmp, blk)
        if lid in ids:
            feats.append(x_tmp)
    return feats   # neck is None in the default config


# --------------------------------------------------------------------------- #
# Deterministic parameter init (shapes follow the module's __init__)
# --------------------------------------------------------------------------- #
def init_resnet_params(key, numC_input, num_layer=(2, 2, 2), stride=(2, 2, 2)):
    num_channels = [numC_input * 2 ** (i + 1) for i in range(len(num_layer))]
    keys = iter(jax.random.split(key, 256))

    def conv_w(cin, cout):
        std = (2.0 / (9.0 * cin)) ** 0.5
        return std * jax.random.normal(next(keys), (3, 3, cin, cout), jnp.float32)

    def bn_fold(c):
        gamma = 1.0 + 0.1 * jax.random.normal(next(keys), (c,), jnp.float32)
        beta = 0.1 * jax.random.normal(next(keys), (c,), jnp.float32)
        rmean = 0.1 * jax.random.normal(next(keys), (c,), jnp.float32)
        rvar = 1.0 + 0.1 * jax.random.uniform(next(keys), (c,), jnp.float32)
        scale = gamma / jnp.sqrt(rvar + BN_EPS)
        shift = beta - rmean * scale
        return scale, shift

    params = []
    curr = numC_input
    for i in range(len(num_layer)):
        cout, s = num_channels[i], stride[i]
        stage = []
        for b in range(num_layer[i]):
            blk_stride = s if b == 0 else 1
            cin = curr if b == 0 else cout
            s1, h1 = bn_fold(cout)
            s2, h2 = bn_fold(cout)
            blk = dict(w1=conv_w(cin, cout), bn1_scale=s1, bn1_shift=h1,
                       w2=conv_w(cout, cout), bn2_scale=s2, bn2_shift=h2,
                       stride=blk_stride)
            if b == 0:  # first block of the stage has the 3x3 conv downsample (+bias)
                blk["wd"] = conv_w(cin, cout)
                blk["bd"] = 0.1 * jax.random.normal(next(keys), (cout,), jnp.float32)
            stage.append(blk)
        params.append(stage)
        curr = cout
    return params


# --------------------------------------------------------------------------- #
if __name__ == "__main__":
    key = jax.random.PRNGKey(0)
    kx, kp = jax.random.split(key)

    N, C, H, W = 2, 4, 16, 16                     # numC_input = 4
    x_nchw = jax.random.normal(kx, (N, C, H, W), dtype=jnp.float32)
    params = init_resnet_params(kp, numC_input=C)

    # NCHW -> NHWC bf16 for the kernels
    x_nhwc = jnp.transpose(x_nchw, (0, 2, 3, 1)).astype(jnp.bfloat16)

    feats_nhwc = resnet_bevdet_forward(x_nhwc, params, basic_block)
    feats_nchw = [jnp.transpose(f.astype(jnp.float32), (0, 3, 1, 2))
                  for f in feats_nhwc]
    feats_nchw = [jax.block_until_ready(f) for f in feats_nchw]

    # sanity check against a pure-JAX reference with matching bf16 numerics
    feats_ref_nhwc = resnet_bevdet_forward(x_nhwc, params, basic_block_ref)
    expected_shapes = [(N, 2 * C, H // 2, W // 2),
                       (N, 4 * C, H // 4, W // 4),
                       (N, 8 * C, H // 8, W // 8)]
    for f, fr, es in zip(feats_nchw, feats_ref_nhwc, expected_shapes):
        assert tuple(f.shape) == es, (tuple(f.shape), es)
        fr_nchw = jnp.transpose(fr.astype(jnp.float32), (0, 3, 1, 2))
        err = float(jnp.max(jnp.abs(f - fr_nchw)))
        ref_mag = float(jnp.max(jnp.abs(fr_nchw))) + 1e-6
        assert err <= 3e-2 * ref_mag + 1e-2, f"mismatch: max abs err {err}"

    print("KERNEL_OK")
</pallas_src>

<mosaic_0001>
module attributes {stable_mosaic.version = 11 : i64} {
  func.func @k(%arg0: i32, %arg1: memref<8x128xf32, #tpu.memory_space<vmem>>, %arg2: memref<8x128xf32, #tpu.memory_space<vmem>>) attributes {dimension_semantics = [#tpu.dimension_semantics<arbitrary>], iteration_bounds = array<i64: 1>, scalar_prefetch = 0 : i64, scratch_operands = 0 : i64, tpu.core_type = #tpu.core_type<tc>, window_params = [{pipeline_mode = #tpu.pipeline_mode<synchronous>, transform_indices = @transform_0, window_bounds = array<i64: 8, 128>}, {pipeline_mode = #tpu.pipeline_mode<synchronous>, transform_indices = @transform_1, window_bounds = array<i64: 8, 128>}]} {
    %c0 = arith.constant 0 : index
    %c0_0 = arith.constant 0 : index
    %0 = vector.load %arg1[%c0, %c0_0] : memref<8x128xf32, #tpu.memory_space<vmem>>, vector<8x128xf32>
    %c0_1 = arith.constant 0 : index
    %c0_2 = arith.constant 0 : index
    %1 = vector.load %arg2[%c0_1, %c0_2] : memref<8x128xf32, #tpu.memory_space<vmem>>, vector<8x128xf32>
    tpu.vector_store %arg2[%c0_1, %c0_2], %0 {strides = array<i32>} : memref<8x128xf32, #tpu.memory_space<vmem>>, vector<8x128xf32>,
    return
  }
  func.func @transform_0(%arg0: i32) -> (i32, i32) {
    %c0_i32 = arith.constant 0 : i32
    %c0_i32_0 = arith.constant 0 : i32
    %c0_i32_1 = arith.constant 0 : i32
    return %c0_i32, %c0_i32_0 : i32, i32
  }
  func.func @transform_1(%arg0: i32) -> (i32, i32) {
    %c0_i32 = arith.constant 0 : i32
    %c0_i32_0 = arith.constant 0 : i32
    %c0_i32_1 = arith.constant 0 : i32
    return %c0_i32, %c0_i32_0 : i32, i32
  }
}

module attributes {stable_mosaic.version = 11 : i64} {
  func.func @kernel(%arg0: i32, %arg1: memref<2x8x2x64xbf16, #tpu.memory_space<vmem>>, %arg2: memref<3x64x128xbf16, #tpu.memory_space<vmem>>, %arg3: memref<1x128xf32, #tpu.memory_space<vmem>>, %arg4: memref<1x128xf32, #tpu.memory_space<vmem>>, %arg5: memref<2x8x128xbf16, #tpu.memory_space<vmem>>, %arg6: memref<2x8x128xf32, #tpu.memory_space<vmem>>) attributes {dimension_semantics = [#tpu.dimension_semantics<parallel>], iteration_bounds = array<i64: 1>, scalar_prefetch = 0 : i64, scratch_operands = 1 : i64, tpu.core_type = #tpu.core_type<tc>, window_params = [{transform_indices = @transform_0, window_bounds = array<i64: 2, 8, 2, 64>}, {pipeline_mode = #tpu.pipeline_mode<synchronous>, transform_indices = @transform_1, window_bounds = array<i64: 3, 64, 128>}, {pipeline_mode = #tpu.pipeline_mode<synchronous>, transform_indices = @transform_2, window_bounds = array<i64: 1, 128>}, {pipeline_mode = #tpu.pipeline_mode<synchronous>, transform_indices = @transform_3, window_bounds = array<i64: 1, 128>}, {transform_indices = @transform_4, window_bounds = array<i64: 2, 8, 128>}]} {
    %c0 = arith.constant 0 : index
    %c0_0 = arith.constant 0 : index
    %c0_1 = arith.constant 0 : index
    %c0_2 = arith.constant 0 : index
    %0 = vector.load %arg1[%c0, %c0_0, %c0_1, %c0_2] : memref<2x8x2x64xbf16, #tpu.memory_space<vmem>>, vector<2x8x1x64xbf16>
    %1 = vector.shape_cast %0 : vector<2x8x1x64xbf16> to vector<2x8x64xbf16>
    %2 = vector.shape_cast %1 : vector<2x8x64xbf16> to vector<16x64xbf16>
    %c1 = arith.constant 1 : index
    %c0_3 = arith.constant 0 : index
    %c0_4 = arith.constant 0 : index
    %3 = vector.load %arg2[%c1, %c0_3, %c0_4] : memref<3x64x128xbf16, #tpu.memory_space<vmem>>, vector<1x64x128xbf16>
    %4 = vector.shape_cast %3 : vector<1x64x128xbf16> to vector<64x128xbf16>
    %cst = arith.constant dense<0.000000e+00> : vector<16x128xf32>
    %5 = tpu.matmul %2, %4, %cst {dimension_numbers = #tpu.dot_dimension_numbers<[1], [0], [0], [1], [0, 0, 1, 1], [], []>} : vector<16x64xbf16>, vector<64x128xbf16>, vector<16x128xf32> -> vector<16x128xf32>
    %6 = vector.shape_cast %5 : vector<16x128xf32> to vector<2x8x128xf32>
    %c0_5 = arith.constant 0 : index
    %c0_6 = arith.constant 0 : index
    %c0_7 = arith.constant 0 : index
    %7 = vector.load %arg6[%c0_5, %c0_6, %c0_7] : memref<2x8x128xf32, #tpu.memory_space<vmem>>, vector<2x8x128xf32>
    tpu.vector_store %arg6[%c0_5, %c0_6, %c0_7], %6 {strides = array<i32>} : memref<2x8x128xf32, #tpu.memory_space<vmem>>, vector<2x8x128xf32>,
    %c0_8 = arith.constant 0 : index
    %c0_9 = arith.constant 0 : index
    %c0_10 = arith.constant 0 : index
    %8 = vector.load %arg6[%c0_8, %c0_9, %c0_10] : memref<2x8x128xf32, #tpu.memory_space<vmem>>, vector<2x8x128xf32>
    %c0_11 = arith.constant 0 : index
    %c0_12 = arith.constant 0 : index
    %c1_13 = arith.constant 1 : index
    %c0_14 = arith.constant 0 : index
    %9 = vector.load %arg1[%c0_11, %c0_12, %c1_13, %c0_14] : memref<2x8x2x64xbf16, #tpu.memory_space<vmem>>, vector<2x8x1x64xbf16>
    %10 = vector.shape_cast %9 : vector<2x8x1x64xbf16> to vector<2x8x64xbf16>
    %11 = vector.shape_cast %10 : vector<2x8x64xbf16> to vector<16x64xbf16>
    %c2 = arith.constant 2 : index
    %c0_15 = arith.constant 0 : index
    %c0_16 = arith.constant 0 : index
    %12 = vector.load %arg2[%c2, %c0_15, %c0_16] : memref<3x64x128xbf16, #tpu.memory_space<vmem>>, vector<1x64x128xbf16>
    %13 = vector.shape_cast %12 : vector<1x64x128xbf16> to vector<64x128xbf16>
    %cst_17 = arith.constant dense<0.000000e+00> : vector<16x128xf32>
    %14 = tpu.matmul %11, %13, %cst_17 {dimension_numbers = #tpu.dot_dimension_numbers<[1], [0], [0], [1], [0, 0, 1, 1], [], []>} : vector<16x64xbf16>, vector<64x128xbf16>, vector<16x128xf32> -> vector<16x128xf32>
    %15 = vector.shape_cast %14 : vector<16x128xf32> to vector<2x8x128xf32>
    %16 = arith.addf %8, %15 : vector<2x8x128xf32>
    %c0_18 = arith.constant 0 : index
    %c0_19 = arith.constant 0 : index
    %c0_20 = arith.constant 0 : index
    %17 = vector.load %arg6[%c0_18, %c0_19, %c0_20] : memref<2x8x128xf32, #tpu.memory_space<vmem>>, vector<2x8x128xf32>
    tpu.vector_store %arg6[%c0_18, %c0_19, %c0_20], %16 {strides = array<i32>} : memref<2x8x128xf32, #tpu.memory_space<vmem>>, vector<2x8x128xf32>,
    %c0_21 = arith.constant 0 : index
    %c1_22 = arith.constant 1 : index
    %c0_23 = arith.constant 0 : index
    %18 = vector.load %arg6[%c0_21, %c1_22, %c0_23] : memref<2x8x128xf32, #tpu.memory_space<vmem>>, vector<2x7x128xf32>
    %c0_24 = arith.constant 0 : index
    %c0_25 = arith.constant 0 : index
    %c1_26 = arith.constant 1 : index
    %c0_27 = arith.constant 0 : index
    %19 = vector.load %arg1[%c0_24, %c0_25, %c1_26, %c0_27] : memref<2x8x2x64xbf16, #tpu.memory_space<vmem>>, vector<2x7x1x64xbf16>
    %20 = vector.shape_cast %19 : vector<2x7x1x64xbf16> to vector<2x7x64xbf16>
    %21 = vector.shape_cast %20 : vector<2x7x64xbf16> to vector<14x64xbf16>
    %c0_28 = arith.constant 0 : index
    %c0_29 = arith.constant 0 : index
    %c0_30 = arith.constant 0 : index
    %22 = vector.load %arg2[%c0_28, %c0_29, %c0_30] : memref<3x64x128xbf16, #tpu.memory_space<vmem>>, vector<1x64x128xbf16>
    %23 = vector.shape_cast %22 : vector<1x64x128xbf16> to vector<64x128xbf16>
    %cst_31 = arith.constant dense<0.000000e+00> : vector<14x128xf32>
    %24 = tpu.matmul %21, %23, %cst_31 {dimension_numbers = #tpu.dot_dimension_numbers<[1], [0], [0], [1], [0, 0, 1, 1], [], []>} : vector<14x64xbf16>, vector<64x128xbf16>, vector<14x128xf32> -> vector<14x128xf32>
    %25 = vector.shape_cast %24 : vector<14x128xf32> to vector<2x7x128xf32>
    %26 = arith.addf %18, %25 : vector<2x7x128xf32>
    %c0_32 = arith.constant 0 : index
    %c1_33 = arith.constant 1 : index
    %c0_34 = arith.constant 0 : index
    %27 = vector.load %arg6[%c0_32, %c1_33, %c0_34] : memref<2x8x128xf32, #tpu.memory_space<vmem>>, vector<2x7x128xf32>
    tpu.vector_store %arg6[%c0_32, %c1_33, %c0_34], %26 {strides = array<i32>} : memref<2x8x128xf32, #tpu.memory_space<vmem>>, vector<2x7x128xf32>,
    %c0_35 = arith.constant 0 : index
    %c0_36 = arith.constant 0 : index
    %c0_37 = arith.constant 0 : index
    %28 = vector.load %arg6[%c0_35, %c0_36, %c0_37] : memref<2x8x128xf32, #tpu.memory_space<vmem>>, vector<2x8x128xf32>
    %c0_38 = arith.constant 0 : index
    %c0_39 = arith.constant 0 : index
    %29 = vector.load %arg3[%c0_38, %c0_39] : memref<1x128xf32, #tpu.memory_space<vmem>>, vector<1x128xf32>
    %30 = vector.shape_cast %29 : vector<1x128xf32> to vector<1x1x128xf32>
    %31 = vector.broadcast %30 : vector<1x1x128xf32> to vector<2x8x128xf32>
    %32 = arith.addf %28, %31 : vector<2x8x128xf32>
    %c0_40 = arith.constant 0 : index
    %c0_41 = arith.constant 0 : index
    %33 = vector.load %arg4[%c0_40, %c0_41] : memref<1x128xf32, #tpu.memory_space<vmem>>, vector<1x128xf32>
    %34 = vector.shape_cast %33 : vector<1x128xf32> to vector<1x1x128xf32>
    %35 = vector.broadcast %34 : vector<1x1x128xf32> to vector<2x8x128xf32>
    %36 = arith.maximumf %32, %35 : vector<2x8x128xf32>
    %37 = arith.truncf %36 : vector<2x8x128xf32> to vector<2x8x128xbf16>
    %c0_42 = arith.constant 0 : index
    %c0_43 = arith.constant 0 : index
    %c0_44 = arith.constant 0 : index
    %38 = vector.load %arg5[%c0_42, %c0_43, %c0_44] : memref<2x8x128xbf16, #tpu.memory_space<vmem>>, vector<2x8x128xbf16>
    tpu.vector_store %arg5[%c0_42, %c0_43, %c0_44], %37 {strides = array<i32>} : memref<2x8x128xbf16, #tpu.memory_space<vmem>>, vector<2x8x128xbf16>,
    return
  }
  func.func @transform_0(%arg0: i32) -> (i32, i32, i32, i32) {
    %c0_i32 = arith.constant 0 : i32
    %c0_i32_0 = arith.constant 0 : i32
    %c0_i32_1 = arith.constant 0 : i32
    %c0_i32_2 = arith.constant 0 : i32
    return %arg0, %c0_i32, %c0_i32_0, %c0_i32_1 : i32, i32, i32, i32
  }
  func.func @transform_1(%arg0: i32) -> (i32, i32, i32) {
    %c0_i32 = arith.constant 0 : i32
    %c0_i32_0 = arith.constant 0 : i32
    %c0_i32_1 = arith.constant 0 : i32
    %c0_i32_2 = arith.constant 0 : i32
    return %c0_i32, %c0_i32_0, %c0_i32_1 : i32, i32, i32
  }
  func.func @transform_2(%arg0: i32) -> (i32, i32) {
    %c0_i32 = arith.constant 0 : i32
    %c0_i32_0 = arith.constant 0 : i32
    %c0_i32_1 = arith.constant 0 : i32
    return %c0_i32, %c0_i32_0 : i32, i32
  }
  func.func @transform_3(%arg0: i32) -> (i32, i32) {
    %c0_i32 = arith.constant 0 : i32
    %c0_i32_0 = arith.constant 0 : i32
    %c0_i32_1 = arith.constant 0 : i32
    return %c0_i32, %c0_i32_0 : i32, i32
  }
  func.func @transform_4(%arg0: i32) -> (i32, i32, i32) {
    %c0_i32 = arith.constant 0 : i32
    %c0_i32_0 = arith.constant 0 : i32
    %c0_i32_1 = arith.constant 0 : i32
    return %arg0, %c0_i32, %c0_i32_0 : i32, i32, i32
  }
}

</mosaic_0001>

<bundles_post_ra>
// kernel: tpu_custom_call.1
= control target key start
LH: loop header
LB: loop body
LE: loop exit
PB: predicated region body
PF: predicated region fallthrough
CT: control target
= control target key end

     0   :  { %6 = vsyncpa [#allocation3], 0  ;;  %s114_s0 = inlined_call_operand.hbm [shape: f32[8,128], index: 0, kind: input, shape index: {}]   ;;  %s115_s1 = inlined_call_operand.hbm [shape: f32[8,128], index: 1, kind: output, shape index: {}]  }
   0x1   :  { %7 = vsyncpa [#allocation4], 0  ;;  %s13_s8 = sshll.u32 %s114_s0, 4  ;;  %s96_s9 = smov [#allocation2]   ;;  %s14_s8 = int_to_ptr.hbm [resolvable:$true] %s13_s8 }
   0x2   :  { %s15_s10 = sshll.u32 %s96_s9, 4  ;;  %s16_s10 = int_to_ptr.vmem [resolvable:$true] %s15_s10 }
   0x3   :  { %18 = dma.hbm_to_vmem [thread:$0]  %s14_s8, 128, %s16_s10, [#allocation3]  }
   0x4   :  { %92 = dma.done.wait [#allocation3], 128  }
   0x5   :  { %93 = vsyncadd [#allocation3], 4294967168  ;;  %s97_s11 = smov [#allocation5]   ;;  %s32_s15 = sshll.u32 %s115_s1, 4  ;;  %v23_v0 = vld [vmem:[#allocation2] sm:$0xff]  ;;  %s33_s15 = int_to_ptr.hbm [resolvable:$true] %s32_s15 }
   0x6   :  { %s30_s12 = sshll.u32 %s97_s11, 4  ;;  %24 = vst [vmem:[#allocation5] sm:$0xff] %v23_v0  ;;  %s31_s12 = int_to_ptr.vmem [resolvable:$true] %s30_s12 }
   0x7   :  { %35 = dma.vmem_to_hbm [thread:$0]  %s31_s12, 128, %s33_s15, [#allocation4]  }
   0x8   :  { %94 = dma.done.wait [#allocation4], 128  }
   0x9   :  { %95 = vsyncadd [#allocation4], 4294967168 }
   0xa   :  { %40 = vsyncpa [#allocation3], 1 }
   0xb   :  { %41 = vsyncpa [#allocation4], 1 }

// kernel: tpu_custom_call.1
= control target key start
LH: loop header
LB: loop body
LE: loop exit
PB: predicated region body
PF: predicated region fallthrough
CT: control target
= control target key end

     0   :  { %9 = vsyncpa [#allocation4], 0  ;;  %s920_s0 = inlined_call_operand.hbm [shape: bf16[2,8,2,64], index: 0, kind: input, shape index: {}]   ;;  %s921_s1 = inlined_call_operand.hbm [shape: bf16[3,64,128], index: 1, kind: input, shape index: {}]   ;;  %s922_s2 = inlined_call_operand.vmem [shape: f32[1,128], index: 2, kind: input, shape index: {}]   ;;  %s923_s3 = inlined_call_operand.vmem [shape: f32[1,128], index: 3, kind: input, shape index: {}]   ;;  %s924_s4 = inlined_call_operand.hbm [shape: bf16[2,8,128], index: 4, kind: output, shape index: {}]  }
   0x1   :  { %10 = vsyncpa [#allocation7], 0 }
   0x2   :  { %11 = vsyncpa [#allocation5], 0  ;;  %s16_s17 = sshll.u32 %s920_s0, 4  ;;  %s812_s18 = smov [#allocation3]   ;;  %s17_s17 = int_to_ptr.hbm [resolvable:$true] %s16_s17 }
   0x3   :  { %s18_s19 = sshll.u32 %s812_s18, 4  ;;  %s29_s22 = sshll.u32 %s921_s1, 4  ;;  %s19_s19 = int_to_ptr.vmem [resolvable:$true] %s18_s19  ;;  %s30_s22 = int_to_ptr.hbm [resolvable:$true] %s29_s22 }
   0x4   :  { %s813_s23 = smov 16   ;;  %s814_s24 = smov 1  }
   0x5   :  { %24 = dma.hbm_to_vmem [thread:$0]  %s17_s17, 256, %s19_s19, [#allocation4], %s813_s23, %s813_s23, %s814_s24  }
   0x6   :  { %s815_s25 = smov [#allocation6]   ;;  %s816_s27 = smov 64  }
   0x7   :  { %s31_s26 = sshll.u32 %s815_s25, 4  ;;  %s817_s28 = smov 4   ;;  %s32_s26 = int_to_ptr.vmem [resolvable:$true] %s31_s26 }
   0x8   :  { %37 = dma.hbm_to_vmem [thread:$0]  %s30_s22, 1536, %s32_s26, [#allocation7], %s816_s27, %s816_s27, %s817_s28  }
   0x9   :  { %806 = dma.done.wait [#allocation4], 256  }
   0xa   :  { %807 = vsyncadd [#allocation4], 4294967040 }
   0xb   :  { %808 = dma.done.wait [#allocation7], 1536  }
   0xc   :  { %809 = vsyncadd [#allocation7], 4294965760  ;;  %v711_v0 = vld [vmem:[#allocation6 + $0x38] sm:$0xff]  ;;  %v710_v3 = vld [vmem:[#allocation6 + $0x30] sm:$0xff]  ;;  %vm157_vm0 = vcmask 1041409   ;;  %vm160_vm1 = vcmask 1042434  }
   0xd   :  { %v715_v1 = vld [vmem:[#allocation6 + $0x58] sm:$0xff]  ;;  %224 = vmatpush.bf16.msra.mxu0 %v711_v0  ;;  %v714_v4 = vld [vmem:[#allocation6 + $0x50] sm:$0xff]  ;;  %v709_v7 = vld [vmem:[#allocation6 + $0x28] sm:$0xff]  ;;  %vm163_vm2 = vcmask 1043459   ;;  %vm166_vm3 = vcmask 1044484   ;;  %vm169_vm4 = vcmask 1045509  }
   0xe   :  { %v719_v2 = vld [vmem:[#allocation6 + $0x18] sm:$0xff]  ;;  %403 = vmatpush.bf16.msra.mxu1 %v715_v1  ;;  %v718_v5 = vld [vmem:[#allocation6 + $0x10] sm:$0xff]  ;;  %v708_v8 = vld [vmem:[#allocation6 + $0x20] sm:$0xff]  ;;  %vm172_vm5 = vcmask 1046534   ;;  %vm175_vm6 = vcmask 1047559   ;;  %vm216_vm7 = vcmask 523264  }
   0xf   :  { %567 = vmatpush.bf16.msra.mxu2 %v719_v2  ;;  %v51_v6 = vld [vmem:[#allocation3] sm:$0x1]  ;;  %v52_v9 = vld [vmem:[#allocation3 + $0x1] sm:$0x1]  ;;  %v53_v11 = vld [vmem:[#allocation3 + $0x2] sm:$0x1] }
  0x10   :  { %77 = vst [vmem:[#allocation1] ss:$9 sm:$0xff] %v51_v6  ;;  %v54_v13 = vld [vmem:[#allocation3 + $0x3] sm:$0x1]  ;;  %v55_v15 = vld [vmem:[#allocation3 + $0x4] sm:$0x1] }
  0x11   :  { %225 = vmatpush.bf16.msra.mxu0 %v710_v3  ;;  %v56_v17 = vld [vmem:[#allocation3 + $0x5] sm:$0x1]  ;;  %v57_v19 = vld [vmem:[#allocation3 + $0x6] sm:$0x1]  ;;  %v58_v21 = vld [vmem:[#allocation3 + $0x7] sm:$0x1] }
  0x12   :  { %404 = vmatpush.bf16.msra.mxu1 %v714_v4  ;;  %v59_v23 = vld [vmem:[#allocation3 + $0x8] sm:$0x1]  ;;  %v60_v25 = vld [vmem:[#allocation3 + $0x9] sm:$0x1]  ;;  %v61_v27 = vld [vmem:[#allocation3 + $0xa] sm:$0x1] }
  0x13   :  { %568 = vmatpush.bf16.msra.mxu2 %v718_v5  ;;  %v62_v29 = vld [vmem:[#allocation3 + $0xb] sm:$0x1]  ;;  %v63_v31 = vld [vmem:[#allocation3 + $0xc] sm:$0x1]  ;;  %v64_v33 = vld [vmem:[#allocation3 + $0xd] sm:$0x1] }
  0x14   :  { %v713_v35 = vld [vmem:[#allocation6 + $0x48] sm:$0xff]  ;;  %v712_v38 = vld [vmem:[#allocation6 + $0x40] sm:$0xff]  ;;  %v65_v44 = vld [vmem:[#allocation3 + $0xe] sm:$0x1]  ;;  %s818_s5 = smov [#allocation8]   ;;  %s643_s9 = sshll.u32 %s924_s4, 4  ;;  %s644_s9 = int_to_ptr.hbm [resolvable:$true] %s643_s9 }
  0x15   :  { %226 = vmatpush.bf16.msra.mxu0 %v709_v7  ;;  %v717_v36 = vld [vmem:[#allocation6 + $0x8] sm:$0xff]  ;;  %v716_v39 = vld [vmem:[#allocation6] sm:$0xff]  ;;  %v66_v61 = vld [vmem:[#allocation3 + $0xf] sm:$0x1]  ;;  %s641_s6 = sshll.u32 %s818_s5, 4  ;;  %s642_s6 = int_to_ptr.vmem [resolvable:$true] %s641_s6 }
  0x16   :  { %405 = vmatpush.bf16.msra.mxu1 %v713_v35 }
  0x17   :  { %v853_v10 = vld [vmem:[#allocation1] sm:$0xf]  ;;  %569 = vmatpush.bf16.msra.mxu2 %v717_v36  ;;  %v244_v36 = vld [vmem:[#allocation3 + $0x6] sm:$0x1] }
  0x18   :  { %81 = vst [vmem:[#allocation1] ss:$9 sm:$0xff] %v52_v9  ;;  %v140_v42 = vunpack.c.l.b16 %v853_v10 }
  0x19   :  { %227 = vmatpush.bf16.msra.mxu0 %v708_v8 }
  0x1a   :  { %406 = vmatpush.bf16.msra.mxu1 %v712_v38  ;;  %v245_v38 = vld [vmem:[#allocation3 + $0x7] sm:$0x1] }
  0x1b   :  { %570 = vmatpush.bf16.msra.mxu2 %v716_v39 }
  0x1f   :  { %v82_v12 = vld [vmem:[#allocation1] sm:$0xf] }
  0x20   :  { %85 = vst [vmem:[#allocation1] ss:$9 sm:$0xff] %v53_v11  ;;  %v141_v37 = vunpack.c.l.b16 %v82_v12 }
  0x22   :  { %v156_v43 = vrot.slane %v141_v37, 7 }
  0x24   :  { %v158_v52 = vsel %vm157_vm0, %v156_v43, %v140_v42  ;;  %v247_v42 = vld [vmem:[#allocation3 + $0x9] sm:$0x1] }
  0x27   :  { %v86_v14 = vld [vmem:[#allocation1] sm:$0xf] }
  0x28   :  { %89 = vst [vmem:[#allocation1] ss:$9 sm:$0xff] %v54_v13  ;;  %v142_v41 = vunpack.c.l.b16 %v86_v14 }
  0x2a   :  { %v159_v50 = vrot.slane %v142_v41, 6 }
  0x2c   :  { %v161_v58 = vsel %vm160_vm1, %v159_v50, %v158_v52  ;;  %v251_v50 = vld [vmem:[#allocation3 + $0xd] sm:$0x1] }
  0x2f   :  { %v90_v16 = vld [vmem:[#allocation1] sm:$0xf] }
  0x30   :  { %93 = vst [vmem:[#allocation1] ss:$9 sm:$0xff] %v55_v15  ;;  %v143_v46 = vunpack.c.l.b16 %v90_v16  ;;  %v238_v15 = vld [vmem:[#allocation3] sm:$0x1] }
  0x32   :  { %v162_v55 = vrot.slane %v143_v46, 5  ;;  %v249_v46 = vld [vmem:[#allocation3 + $0xb] sm:$0x1] }
  0x34   :  { %v164_v1 = vsel %vm163_vm2, %v162_v55, %v161_v58 }
  0x37   :  { %v94_v18 = vld [vmem:[#allocation1] sm:$0xf] }
  0x38   :  { %97 = vst [vmem:[#allocation1] ss:$9 sm:$0xff] %v56_v17  ;;  %v144_v53 = vunpack.c.l.b16 %v94_v18 }
  0x3a   :  { %v165_v62 = vrot.slane %v144_v53, 4 }
  0x3c   :  { %v167_v8 = vsel %vm166_vm3, %v165_v62, %v164_v1 }
  0x3f   :  { %v855_v20 = vld [vmem:[#allocation1] sm:$0xf] }
  0x40   :  { %101 = vst [vmem:[#allocation1] ss:$9 sm:$0xff] %v57_v19  ;;  %v145_v59 = vunpack.c.l.b16 %v855_v20 }
  0x42   :  { %v168_v5 = vrot.slane %v145_v59, 3 }
  0x44   :  { %v170_v13 = vsel %vm169_vm4, %v168_v5, %v167_v8 }
  0x47   :  { %v857_v22 = vld [vmem:[#allocation1] sm:$0xf] }
  0x48   :  { %105 = vst [vmem:[#allocation1] ss:$9 sm:$0xff] %v58_v21  ;;  %v146_v3 = vunpack.c.l.b16 %v857_v22 }
  0x4a   :  { %v171_v11 = vrot.slane %v146_v3, 2 }
  0x4c   :  { %v173_v19 = vsel %vm172_vm5, %v171_v11, %v170_v13 }
  0x4f   :  { %v859_v24 = vld [vmem:[#allocation1] sm:$0xf] }
  0x50   :  { %109 = vst [vmem:[#allocation1] ss:$9 sm:$0xff] %v59_v23  ;;  %v147_v9 = vunpack.c.l.b16 %v859_v24 }
  0x52   :  { %v174_v16 = vrot.slane %v147_v9, 1 }
  0x54   :  { %v176_v22 = vsel %vm175_vm6, %v174_v16, %v173_v19 }
  0x57   :  { %v110_v26 = vld [vmem:[#allocation1] sm:$0xf] }
  0x58   :  { %113 = vst [vmem:[#allocation1] ss:$9 sm:$0xff] %v60_v25  ;;  %v148_v47 = vunpack.c.l.b16 %v110_v26  ;;  %v239_v26 = vld [vmem:[#allocation3 + $0x1] sm:$0x1] }
  0x5f   :  { %v114_v28 = vld [vmem:[#allocation1] sm:$0xf] }
  0x60   :  { %117 = vst [vmem:[#allocation1] ss:$9 sm:$0xff] %v61_v27  ;;  %v149_v40 = vunpack.c.l.b16 %v114_v28  ;;  %v240_v28 = vld [vmem:[#allocation3 + $0x2] sm:$0x1] }
  0x62   :  { %v177_v48 = vrot.slane %v149_v40, 7  ;;  %v246_v40 = vld [vmem:[#allocation3 + $0x8] sm:$0x1] }
  0x64   :  { %v178_v56 = vsel %vm157_vm0, %v177_v48, %v148_v47  ;;  %v250_v48 = vld [vmem:[#allocation3 + $0xc] sm:$0x1] }
  0x67   :  { %v118_v30 = vld [vmem:[#allocation1] sm:$0xf] }
  0x68   :  { %121 = vst [vmem:[#allocation1] ss:$9 sm:$0xff] %v62_v29  ;;  %v150_v45 = vunpack.c.l.b16 %v118_v30  ;;  %v241_v30 = vld [vmem:[#allocation3 + $0x3] sm:$0x1] }
  0x6a   :  { %v179_v54 = vrot.slane %v150_v45, 6 }
  0x6c   :  { %v180_v63 = vsel %vm160_vm1, %v179_v54, %v178_v56 }
  0x6f   :  { %v122_v32 = vld [vmem:[#allocation1] sm:$0xf] }
  0x70   :  { %125 = vst [vmem:[#allocation1] ss:$9 sm:$0xff] %v63_v31  ;;  %v151_v51 = vunpack.c.l.b16 %v122_v32  ;;  %v242_v32 = vld [vmem:[#allocation3 + $0x4] sm:$0x1] }
  0x72   :  { %v181_v60 = vrot.slane %v151_v51, 5 }
  0x74   :  { %v182_v6 = vsel %vm163_vm2, %v181_v60, %v180_v63 }
  0x77   :  { %v126_v34 = vld [vmem:[#allocation1] sm:$0xf] }
  0x78   :  { %129 = vst [vmem:[#allocation1] ss:$9 sm:$0xff] %v64_v33  ;;  %v152_v57 = vunpack.c.l.b16 %v126_v34  ;;  %v243_v34 = vld [vmem:[#allocation3 + $0x5] sm:$0x1] }
  0x7a   :  { %v183_v4 = vrot.slane %v152_v57, 4  ;;  %v252_v57 = vld [vmem:[#allocation3 + $0xe] sm:$0x1] }
  0x7c   :  { %v184_v12 = vsel %vm166_vm3, %v183_v4, %v182_v6 }
  0x7f   :  { %v130_v49 = vld [vmem:[#allocation1] sm:$0xf] }
  0x80   :  { %133 = vst [vmem:[#allocation1] ss:$9 sm:$0xff] %v65_v44  ;;  %v153_v0 = vunpack.c.l.b16 %v130_v49  ;;  %v248_v44 = vld [vmem:[#allocation3 + $0xa] sm:$0x1] }
  0x82   :  { %v185_v10 = vrot.slane %v153_v0, 3 }
  0x84   :  { %v186_v17 = vsel %vm169_vm4, %v185_v10, %v184_v12  ;;  %v253_v10 = vld [vmem:[#allocation3 + $0xf] sm:$0x1] }
  0x87   :  { %v134_v2 = vld [vmem:[#allocation1] sm:$0xf] }
  0x88   :  { %137 = vst [vmem:[#allocation1] ss:$9 sm:$0xff] %v66_v61  ;;  %v154_v7 = vunpack.c.l.b16 %v134_v2 }
  0x8a   :  { %v187_v14 = vrot.slane %v154_v7, 2 }
  0x8c   :  { %v188_v21 = vsel %vm172_vm5, %v187_v14, %v186_v17 }
  0x8f   :  { %v138_v18 = vld [vmem:[#allocation1] sm:$0xf] }
  0x90   :  { %v155_v20 = vunpack.c.l.b16 %v138_v18  ;;  %264 = vst [vmem:[#allocation1] ss:$9 sm:$0xff] %v238_v15 }
  0x92   :  { %v189_v23 = vrot.slane %v155_v20, 1 }
  0x94   :  { %v190_v24 = vsel %vm175_vm6, %v189_v23, %v188_v21 }
  0x95   :  { %v191_v25 = vpack.c.b16 %v190_v24, %v176_v22 }
  0x97   :  { %673 = vmatmul.msk.bf16.vlgmr.msra.gmra.mxu0 %vm216_vm7, %v191_v25  ;;  %v265_v27 = vld [vmem:[#allocation1] sm:$0xf] }
  0x98   :  { %268 = vst [vmem:[#allocation1] ss:$9 sm:$0xff] %v239_v26  ;;  %v327_v52 = vunpack.c.l.b16 %v265_v27 }
  0x9a   :  { %v343_v56 = vrot.slane %v327_v52, 1 }
  0x9f   :  { %v269_v29 = vld [vmem:[#allocation1] sm:$0xf] }
  0xa0   :  { %272 = vst [vmem:[#allocation1] ss:$9 sm:$0xff] %v240_v28  ;;  %v328_v55 = vunpack.c.l.b16 %v269_v29  ;;  %v419_v28 = vld [vmem:[#allocation3] sm:$0x1] }
  0xa2   :  { %v344_v1 = vsel %vm157_vm0, %v328_v55, %v343_v56  ;;  %v428_v55 = vld [vmem:[#allocation3 + $0xa] sm:$0x1] }
  0xa7   :  { %v273_v31 = vld [vmem:[#allocation1] sm:$0xf] }
  0xa8   :  { %276 = vst [vmem:[#allocation1] ss:$9 sm:$0xff] %v241_v30  ;;  %v329_v54 = vunpack.c.l.b16 %v273_v31 }
  0xaa   :  { %v345_v63 = vrot.slane %v329_v54, 7 }
  0xac   :  { %v346_v7 = vsel %vm160_vm1, %v345_v63, %v344_v1  ;;  %v431_v1 = vld [vmem:[#allocation3 + $0xd] sm:$0x1] }
  0xaf   :  { %v277_v33 = vld [vmem:[#allocation1] sm:$0xf] }
  0xb0   :  { %280 = vst [vmem:[#allocation1] ss:$9 sm:$0xff] %v242_v32  ;;  %v330_v59 = vunpack.c.l.b16 %v277_v33 }
  0xb2   :  { %v347_v4 = vrot.slane %v330_v59, 6  ;;  %v430_v59 = vld [vmem:[#allocation3 + $0xc] sm:$0x1] }
  0xb4   :  { %v348_v14 = vsel %vm163_vm2, %v347_v4, %v346_v7 }
  0xb7   :  { %v281_v35 = vld [vmem:[#allocation1] sm:$0xf] }
  0xb8   :  { %284 = vst [vmem:[#allocation1] ss:$9 sm:$0xff] %v243_v34  ;;  %v331_v2 = vunpack.c.l.b16 %v281_v35 }
  0xba   :  { %v349_v11 = vrot.slane %v331_v2, 5 }
  0xbc   :  { %v350_v21 = vsel %vm166_vm3, %v349_v11, %v348_v14  ;;  %v432_v14 = vld [vmem:[#allocation3 + $0xe] sm:$0x1] }
  0xbf   :  { %v285_v37 = vld [vmem:[#allocation1] sm:$0xf] }
  0xc0   :  { %288 = vst [vmem:[#allocation1] ss:$9 sm:$0xff] %v244_v36  ;;  %v332_v8 = vunpack.c.l.b16 %v285_v37 }
  0xc2   :  { %v351_v18 = vrot.slane %v332_v8, 4 }
  0xc4   :  { %v352_v26 = vsel %vm169_vm4, %v351_v18, %v350_v21 }
  0xc7   :  { %v289_v39 = vld [vmem:[#allocation1] sm:$0xf] }
  0xc8   :  { %292 = vst [vmem:[#allocation1] ss:$9 sm:$0xff] %v245_v38  ;;  %v333_v16 = vunpack.c.l.b16 %v289_v39  ;;  %v420_v39 = vld [vmem:[#allocation3 + $0x1] sm:$0x1] }
  0xca   :  { %v353_v24 = vrot.slane %v333_v16, 3 }
  0xcc   :  { %v354_v32 = vsel %vm172_vm5, %v353_v24, %v352_v26 }
  0xcf   :  { %v293_v41 = vld [vmem:[#allocation1] sm:$0xf] }
  0xd0   :  { %296 = vst [vmem:[#allocation1] ss:$9 sm:$0xff] %v246_v40  ;;  %v334_v22 = vunpack.c.l.b16 %v293_v41  ;;  %v421_v41 = vld [vmem:[#allocation3 + $0x2] sm:$0x1] }
  0xd2   :  { %v355_v29 = vrot.slane %v334_v22, 2 }
  0xd4   :  { %v356_v35 = vsel %vm175_vm6, %v355_v29, %v354_v32 }
  0xd7   :  { %v297_v43 = vld [vmem:[#allocation1] sm:$0xf] }
  0xd8   :  { %300 = vst [vmem:[#allocation1] ss:$9 sm:$0xff] %v247_v42  ;;  %v335_v53 = vunpack.c.l.b16 %v297_v43  ;;  %v422_v43 = vld [vmem:[#allocation3 + $0x3] sm:$0x1] }
  0xda   :  { %v357_v61 = vrot.slane %v335_v53, 1  ;;  %v427_v53 = vld [vmem:[#allocation3 + $0x9] sm:$0x1] }
  0xdf   :  { %v301_v45 = vld [vmem:[#allocation1] sm:$0xf] }
  0xe0   :  { %304 = vst [vmem:[#allocation1] ss:$9 sm:$0xff] %v248_v44  ;;  %v336_v60 = vunpack.c.l.b16 %v301_v45  ;;  %v423_v45 = vld [vmem:[#allocation3 + $0x4] sm:$0x1] }
  0xe2   :  { %v358_v5 = vsel %vm157_vm0, %v336_v60, %v357_v61 }
  0xe7   :  { %v305_v47 = vld [vmem:[#allocation1] sm:$0xf] }
  0xe8   :  { %308 = vst [vmem:[#allocation1] ss:$9 sm:$0xff] %v249_v46  ;;  %v337_v58 = vunpack.c.l.b16 %v305_v47  ;;  %v424_v47 = vld [vmem:[#allocation3 + $0x5] sm:$0x1] }
  0xea   :  { %v359_v3 = vrot.slane %v337_v58, 7 }
  0xec   :  { %v360_v12 = vsel %vm160_vm1, %v359_v3, %v358_v5 }
  0xef   :  { %v309_v49 = vld [vmem:[#allocation1] sm:$0xf] }
  0xf0   :  { %312 = vst [vmem:[#allocation1] ss:$9 sm:$0xff] %v250_v48  ;;  %v338_v0 = vunpack.c.l.b16 %v309_v49  ;;  %v425_v49 = vld [vmem:[#allocation3 + $0x6] sm:$0x1] }
  0xf2   :  { %v361_v9 = vrot.slane %v338_v0, 6 }
  0xf4   :  { %v362_v19 = vsel %vm163_vm2, %v361_v9, %v360_v12 }
  0xf7   :  { %v313_v51 = vld [vmem:[#allocation1] sm:$0xf] }
  0xf8   :  { %316 = vst [vmem:[#allocation1] ss:$9 sm:$0xff] %v251_v50  ;;  %v339_v6 = vunpack.c.l.b16 %v313_v51  ;;  %v426_v51 = vld [vmem:[#allocation3 + $0x8] sm:$0x1] }
  0xfa   :  { %v363_v17 = vrot.slane %v339_v6, 5 }
  0xfc   :  { %v364_v25 = vsel %vm166_vm3, %v363_v17, %v362_v19 }
  0xff   :  { %v317_v62 = vld [vmem:[#allocation1] sm:$0xf] }
 0x100   :  { %320 = vst [vmem:[#allocation1] ss:$9 sm:$0xff] %v252_v57  ;;  %v340_v13 = vunpack.c.l.b16 %v317_v62  ;;  %v429_v57 = vld [vmem:[#allocation3 + $0xb] sm:$0x1] }
 0x102   :  { %v365_v23 = vrot.slane %v340_v13, 4 }
 0x104   :  { %v366_v30 = vsel %vm169_vm4, %v365_v23, %v364_v25 }
 0x107   :  { %v321_v15 = vld [vmem:[#allocation1] sm:$0xf] }
 0x108   :  { %324 = vst [vmem:[#allocation1] ss:$9 sm:$0xff] %v253_v10  ;;  %v341_v20 = vunpack.c.l.b16 %v321_v15 }
 0x10a   :  { %v367_v27 = vrot.slane %v341_v20, 3 }
 0x10c   :  { %v368_v34 = vsel %vm172_vm5, %v367_v27, %v366_v30 }
 0x10f   :  { %v325_v31 = vld [vmem:[#allocation1] sm:$0xf] }
 0x110   :  { %v342_v33 = vunpack.c.l.b16 %v325_v31  ;;  %442 = vst [vmem:[#allocation1] ss:$9 sm:$0xff] %v419_v28 }
 0x112   :  { %v369_v36 = vrot.slane %v342_v33, 2 }
 0x114   :  { %v370_v37 = vsel %vm175_vm6, %v369_v36, %v368_v34 }
 0x115   :  { %v371_v38 = vpack.c.b16 %v370_v37, %v356_v35 }
 0x117   :  { %690 = vmatmul.msk.bf16.vlgmr.msra.gmra.mxu1 %vm216_vm7, %v371_v38  ;;  %v443_v40 = vld [vmem:[#allocation1] sm:$0xf] }
 0x118   :  { %446 = vst [vmem:[#allocation1] ss:$9 sm:$0xff] %v420_v39  ;;  %v497_v61 = vunpack.c.l.b16 %v443_v40 }
 0x11a   :  { %v511_v0 = vrot.slane %v497_v61, 1 }
 0x11f   :  { %v447_v42 = vld [vmem:[#allocation1] sm:$0xf] }
 0x120   :  { %450 = vst [vmem:[#allocation1] ss:$9 sm:$0xff] %v421_v41  ;;  %v498_v63 = vunpack.c.l.b16 %v447_v42  ;;  %v229_v41 = vpop.f32.mrf.mxu0 }
 0x122   :  { %v512_v6 = vsel %vm157_vm0, %v498_v63, %v511_v0 }
 0x127   :  { %v451_v44 = vld [vmem:[#allocation1] sm:$0xf] }
 0x128   :  { %454 = vst [vmem:[#allocation1] ss:$9 sm:$0xff] %v422_v43  ;;  %v499_v62 = vunpack.c.l.b16 %v451_v44  ;;  %v231_v44 = vpop.f32.mrf.mxu0 }
 0x12a   :  { %v513_v4 = vrot.slane %v499_v62, 7 }
 0x12c   :  { %v514_v10 = vsel %vm160_vm1, %v513_v4, %v512_v6  ;;  %v733_v6 = vld [vmem:[%s923_s3] ss:$0 sm:$0xff] }
 0x12f   :  { %v455_v46 = vld [vmem:[#allocation1] sm:$0xf] }
 0x130   :  { %458 = vst [vmem:[#allocation1] ss:$9 sm:$0xff] %v423_v45  ;;  %v500_v2 = vunpack.c.l.b16 %v455_v46 }
 0x132   :  { %v515_v8 = vrot.slane %v500_v2, 6 }
 0x134   :  { %v516_v17 = vsel %vm163_vm2, %v515_v8, %v514_v10 }
 0x137   :  { %v459_v48 = vld [vmem:[#allocation1] sm:$0xf] }
 0x138   :  { %462 = vst [vmem:[#allocation1] ss:$9 sm:$0xff] %v424_v47  ;;  %v501_v7 = vunpack.c.l.b16 %v459_v48 }
 0x13a   :  { %v517_v15 = vrot.slane %v501_v7, 5 }
 0x13c   :  { %v518_v24 = vsel %vm166_vm3, %v517_v15, %v516_v17 }
 0x13f   :  { %v463_v50 = vld [vmem:[#allocation1] sm:$0xf] }
 0x140   :  { %466 = vst [vmem:[#allocation1] ss:$9 sm:$0xff] %v425_v49  ;;  %v502_v11 = vunpack.c.l.b16 %v463_v50 }
 0x142   :  { %v519_v21 = vrot.slane %v502_v11, 4 }
 0x144   :  { %v520_v29 = vsel %vm169_vm4, %v519_v21, %v518_v24 }
 0x147   :  { %v467_v52 = vld [vmem:[#allocation1] sm:$0xf] }
 0x148   :  { %470 = vst [vmem:[#allocation1] ss:$9 sm:$0xff] %v426_v51  ;;  %v503_v19 = vunpack.c.l.b16 %v467_v52 }
 0x14a   :  { %v521_v27 = vrot.slane %v503_v19, 3 }
 0x14c   :  { %v522_v34 = vsel %vm172_vm5, %v521_v27, %v520_v29 }
 0x14f   :  { %v471_v54 = vld [vmem:[#allocation1] sm:$0xf] }
 0x150   :  { %474 = vst [vmem:[#allocation1] ss:$9 sm:$0xff] %v427_v53  ;;  %v504_v25 = vunpack.c.l.b16 %v471_v54 }
 0x152   :  { %v523_v31 = vrot.slane %v504_v25, 2 }
 0x154   :  { %v524_v37 = vsel %vm175_vm6, %v523_v31, %v522_v34 }
 0x157   :  { %v475_v56 = vld [vmem:[#allocation1] sm:$0xf] }
 0x158   :  { %478 = vst [vmem:[#allocation1] ss:$9 sm:$0xff] %v428_v55  ;;  %v505_v5 = vunpack.c.l.b16 %v475_v56 }
 0x15a   :  { %v525_v13 = vrot.slane %v505_v5, 1 }
 0x15f   :  { %v479_v58 = vld [vmem:[#allocation1] sm:$0xf] }
 0x160   :  { %482 = vst [vmem:[#allocation1] ss:$9 sm:$0xff] %v429_v57  ;;  %v506_v12 = vunpack.c.l.b16 %v479_v58 }
 0x162   :  { %v526_v22 = vsel %vm157_vm0, %v506_v12, %v525_v13 }
 0x167   :  { %v483_v60 = vld [vmem:[#allocation1] sm:$0xf] }
 0x168   :  { %486 = vst [vmem:[#allocation1] ss:$9 sm:$0xff] %v430_v59  ;;  %v507_v9 = vunpack.c.l.b16 %v483_v60 }
 0x16a   :  { %v527_v20 = vrot.slane %v507_v9, 7 }
 0x16c   :  { %v528_v28 = vsel %vm160_vm1, %v527_v20, %v526_v22 }
 0x16f   :  { %v487_v3 = vld [vmem:[#allocation1] sm:$0xf] }
 0x170   :  { %490 = vst [vmem:[#allocation1] ss:$9 sm:$0xff] %v431_v1  ;;  %v508_v16 = vunpack.c.l.b16 %v487_v3  ;;  %v732_v3 = vld [vmem:[%s922_s2] ss:$0 sm:$0xff] }
 0x172   :  { %v529_v26 = vrot.slane %v508_v16, 6 }
 0x174   :  { %v530_v32 = vsel %vm163_vm2, %v529_v26, %v528_v28 }
 0x177   :  { %v491_v18 = vld [vmem:[#allocation1] sm:$0xf] }
 0x178   :  { %494 = vst [vmem:[#allocation1] ss:$9 sm:$0xff] %v432_v14  ;;  %v509_v23 = vunpack.c.l.b16 %v491_v18 }
 0x17a   :  { %v531_v30 = vrot.slane %v509_v23, 5 }
 0x17c   :  { %v532_v36 = vsel %vm166_vm3, %v531_v30, %v530_v32 }
 0x17f   :  { %v495_v33 = vld [vmem:[#allocation1] sm:$0xf] }
 0x180   :  { %v510_v35 = vunpack.c.l.b16 %v495_v33 }
 0x182   :  { %v533_v38 = vrot.slane %v510_v35, 4 }
 0x184   :  { %v534_v39 = vsel %vm169_vm4, %v533_v38, %v532_v36 }
 0x185   :  { %v535_v40 = vpack.c.b16 %v534_v39, %v524_v37 }
 0x187   :  { %707 = vmatmul.msk.bf16.vlgmr.msra.gmra.mxu2 %vm216_vm7, %v535_v40 }
 0x194   :  { %v408_v42 = vpop.f32.mrf.mxu1 }
 0x195   :  { %v413_v43 = vadd.f32 %v408_v42, %v229_v41 }
 0x197   :  { %415 = vst [vmem:[#allocation2] sm:$0xff] %v413_v43 }
 0x19c   :  { %v410_v45 = vpop.f32.mrf.mxu1 }
 0x19d   :  { %v414_v46 = vadd.f32 %v410_v45, %v231_v44 }
 0x19e   :  { %v417_v59 = vld [vmem:[#allocation2 + $0x1] sm:$0x7f] }
 0x19f   :  { %416 = vst [vmem:[#allocation2 + $0x8] sm:$0xff] %v414_v46 }
 0x1a6   :  { %v418_v0 = vld [vmem:[#allocation2 + $0x9] sm:$0x7f] }
 0x20a   :  { %v572_v47 = vpop.f32.mrf.mxu2 }
 0x20b   :  { %v579_v48 = vrot.slane %v572_v47, 1  ;;  %v580_v49 = vrot.slane %v572_v47, 2  ;;  %v581_v50 = vrot.slane %v572_v47, 3  ;;  %591 = vst [vmem:[#allocation1] ss:$9 sm:$0xff] %v572_v47  ;;  %v582_v51 = vrot.slane %v572_v47, 4 }
 0x20c   :  { %v583_v52 = vrot.slane %v572_v47, 5  ;;  %v584_v53 = vrot.slane %v572_v47, 6  ;;  %v585_v55 = vrot.slane %v572_v47, 7 }
 0x20d   :  { %593 = vst [vmem:[#allocation1 + $0x1] ss:$9 sm:$0xff] %v579_v48 }
 0x20e   :  { %595 = vst [vmem:[#allocation1 + $0x2] ss:$9 sm:$0xff] %v580_v49 }
 0x20f   :  { %597 = vst [vmem:[#allocation1 + $0x3] ss:$9 sm:$0xff] %v581_v50 }
 0x210   :  { %599 = vst [vmem:[#allocation1 + $0x4] ss:$9 sm:$0xff] %v582_v51 }
 0x211   :  { %601 = vst [vmem:[#allocation1 + $0x5] ss:$9 sm:$0xff] %v583_v52 }
 0x212   :  { %603 = vst [vmem:[#allocation1 + $0x6] ss:$9 sm:$0xff] %v584_v53  ;;  %v574_v54 = vpop.f32.mrf.mxu2 }
 0x213   :  { %v586_v56 = vrot.slane %v574_v54, 1  ;;  %v587_v57 = vrot.slane %v574_v54, 2  ;;  %v588_v60 = vrot.slane %v574_v54, 3  ;;  %v589_v61 = vrot.slane %v574_v54, 4 }
 0x214   :  { %v590_v62 = vrot.slane %v574_v54, 5 }
 0x219   :  { %v604_v58 = vld [vmem:[#allocation1] sm:$0xff] }
 0x21a   :  { %605 = vst [vmem:[#allocation1] ss:$9 sm:$0xff] %v585_v55  ;;  %v615_v63 = vadd.f32 %v604_v58, %v417_v59 }
 0x21b   :  { %606 = vst [vmem:[#allocation1 + $0x1] ss:$9 sm:$0xff] %v574_v54 }
 0x21c   :  { %607 = vst [vmem:[#allocation1 + $0x2] ss:$9 sm:$0xff] %v586_v56 }
 0x21d   :  { %608 = vst [vmem:[#allocation1 + $0x3] ss:$9 sm:$0xff] %v587_v57 }
 0x21e   :  { %609 = vst [vmem:[#allocation1 + $0x4] ss:$9 sm:$0xff] %v588_v60 }
 0x21f   :  { %610 = vst [vmem:[#allocation1 + $0x5] ss:$9 sm:$0xff] %v589_v61 }
 0x220   :  { %611 = vst [vmem:[#allocation1 + $0x6] ss:$9 sm:$0xff] %v590_v62 }
 0x221   :  { %617 = vst [vmem:[#allocation2 + $0x1] sm:$0x7f] %v615_v63 }
 0x227   :  { %v612_v1 = vld [vmem:[#allocation1] sm:$0xff] }
 0x228   :  { %v616_v2 = vadd.f32 %v612_v1, %v418_v0  ;;  %v619_v4 = vld [vmem:[#allocation2] sm:$0xff] }
 0x229   :  { %v625_v5 = vadd.f32 %v732_v3, %v619_v4 }
 0x22a   :  { %618 = vst [vmem:[#allocation2 + $0x9] sm:$0x7f] %v616_v2 }
 0x22b   :  { %v631_v9 = vmax.f32 %v625_v5, %v733_v6 }
 0x231   :  { %v620_v7 = vld [vmem:[#allocation2 + $0x8] sm:$0xff] }
 0x232   :  { %v626_v8 = vadd.f32 %v732_v3, %v620_v7 }
 0x234   :  { %v632_v10 = vmax.f32 %v626_v8, %v733_v6 }
 0x236   :  { %v723_v11 = vpack.c.bf16 %v632_v10, %v631_v9 }
 0x238   :  { %724 = vst [vmem:[#allocation8] sm:$0xff] %v723_v11  }
 0x239   :  { %649 = dma.vmem_to_hbm [thread:$0]  %s642_s6, 128, %s644_s9, [#allocation5], %s816_s27, %s816_s27, %s817_s28  }
 0x23a   :  { %810 = dma.done.wait [#allocation5], 128  }
 0x23b   :  { %811 = vsyncadd [#allocation5], 4294967168 }
 0x23c   :  { %654 = vsyncpa [#allocation4], 1 }
 0x23d   :  { %655 = vsyncpa [#allocation7], 1 }
 0x23e   :  { %656 = vsyncpa [#allocation5], 1 }

</bundles_post_ra>
